<compile_context>
chip_gen: v7x
topology: tpu7x:2x2x1
jax: 0.10.0
libtpu: 0.0.40
codegen_flags: <defaults>
</compile_context>

<pallas_src>
import jax
import jax.numpy as jnp
from jax.experimental import pallas as pl
from jax.experimental.pallas import tpu as pltpu


# 2048 rows x 128 lanes = 256K f32 batch elements per grid step.
_TR_MAX = 2048


def netx_kernel(w_ref, b_ref, xt_ref, o_ref):
    # w_ref: SMEM (3,) f32   b_ref: SMEM (1,) f32   (resident across all steps)
    # xt_ref: VMEM (3, TR, 128) f32 — feature f is xt_ref[f], batch on (TR,128)
    # o_ref:  VMEM (TR, 128) f32    — lane-dense output slab (unmasked stores)
    x0 = xt_ref[0]            # (TR, 128)
    x1 = xt_ref[1]
    x2 = xt_ref[2]
    # Linear(3, 1): scalar * vreg FMAs on the VPU, then ExpActivation on EUP.
    y = w_ref[0] * x0 + w_ref[1] * x1 + w_ref[2] * x2 + b_ref[0]
    o_ref[...] = jnp.exp(y)


def _pick_tile_rows(num_rows):
    """Rows-of-128 per grid step.

    Big enough that per-step DMA hides the ~0.35us grid-step overhead, split
    into >= 2 roughly-equal chunks (v7x megacore) once the batch is mid-sized,
    and 8-sublane aligned whenever the block does not cover the full axis.
    """
    if num_rows < 16:
        return num_rows          # single block == full dim (no 8-multiple req.)
    num_chunks = max(2, pl.cdiv(num_rows, _TR_MAX))
    tr = pl.cdiv(num_rows, num_chunks)
    return ((tr + 7) // 8) * 8


def netx_forward_feature_major(xt, weight, bias):
    """xt: (3, N) f32 feature-major input (skips the transpose copy)."""
    f, n = xt.shape
    assert f == 3, "NetX expects 3 input features"

    num_rows = pl.cdiv(n, 128)
    n_pad = num_rows * 128
    if n_pad != n:
        # Zero pad -> padded columns evaluate to exp(bias) (finite), sliced off.
        xt = jnp.pad(xt, ((0, 0), (0, n_pad - n)))
    xt_r = xt.reshape(3, num_rows, 128)      # free metadata reshape

    tr = _pick_tile_rows(num_rows)
    num_tiles = pl.cdiv(num_rows, tr)        # uneven last block is clipped

    out = pl.pallas_call(
        netx_kernel,
        out_shape=jax.ShapeDtypeStruct((num_rows, 128), xt.dtype),
        grid=(num_tiles,),
        in_specs=[
            # Parameter scalars -> SMEM, resident across all grid steps.
            pl.BlockSpec(memory_space=pltpu.MemorySpace.SMEM),
            pl.BlockSpec(memory_space=pltpu.MemorySpace.SMEM),
            # Batch-tiled, lane-dense input: (3, TR, 128) per step.
            pl.BlockSpec((3, tr, 128), lambda i: (0, i, 0)),
        ],
        out_specs=pl.BlockSpec((tr, 128), lambda i: (i, 0)),
        compiler_params=pltpu.CompilerParams(
            dimension_semantics=("parallel",),
        ),
        cost_estimate=pl.CostEstimate(
            flops=6 * n_pad,
            transcendentals=n_pad,
            bytes_accessed=16 * n_pad,     # 12 B read + 4 B written per row
        ),
    )(weight.reshape(3), bias.reshape(1), xt_r)

    out = out.reshape(n_pad)
    if n_pad != n:
        out = out[:n]
    return out.reshape(n, 1)


def netx_forward(x, weight, bias):
    """x: (N, 3) f32, weight: (1, 3) f32, bias: (1,) f32 -> (N, 1) f32."""
    n, f = x.shape
    assert f == 3, "NetX expects 3 input features"
    # TODO(synk): if the producer can hand over feature-major (3, N) data, call
    # netx_forward_feature_major directly and skip this transpose copy.
    return netx_forward_feature_major(x.T, weight, bias)


if __name__ == "__main__":
    key = jax.random.PRNGKey(0)
    kx, kw, kx2 = jax.random.split(key, 3)

    # Deterministic parameter init matching NetX.__init__:
    #   nn.init.uniform_(weight, 0, 1), nn.init.zeros_(bias)
    weight = jax.random.uniform(kw, (1, 3), dtype=jnp.float32, minval=0.0, maxval=1.0)
    bias = jnp.zeros((1,), dtype=jnp.float32)

    # Small example input consistent with Linear(3, 1): batch=8, features=3.
    x = jax.random.normal(kx, (8, 3), dtype=jnp.float32)
    out = netx_forward(x, weight, bias)
    out = jax.block_until_ready(out)
    ref = jnp.exp(x @ weight.T + bias)
    assert out.shape == (8, 1)
    assert jnp.allclose(out, ref, rtol=1e-5, atol=1e-5)

    # Second check exercising padding + multi-tile (uneven) grid path.
    x2 = jax.random.normal(kx2, (3000, 3), dtype=jnp.float32)
    out2 = jax.block_until_ready(netx_forward(x2, weight, bias))
    ref2 = jnp.exp(x2 @ weight.T + bias)
    assert out2.shape == (3000, 1)
    assert jnp.allclose(out2, ref2, rtol=1e-5, atol=1e-5)

    print("KERNEL_OK")
</pallas_src>

<mosaic_0001>
module attributes {stable_mosaic.version = 11 : i64} {
  func.func @netx_kernel(%arg0: i32, %arg1: memref<3xf32, #tpu.memory_space<smem>>, %arg2: memref<1xf32, #tpu.memory_space<smem>>, %arg3: memref<3x1x128xf32, #tpu.memory_space<vmem>>, %arg4: memref<1x128xf32, #tpu.memory_space<vmem>>) attributes {dimension_semantics = [#tpu.dimension_semantics<parallel>], iteration_bounds = array<i64: 1>, scalar_prefetch = 0 : i64, scratch_operands = 0 : i64, tpu.core_type = #tpu.core_type<tc>, window_params = [{transform_indices = @transform_0, window_bounds = array<i64: 3>}, {transform_indices = @transform_1, window_bounds = array<i64: 1>}, {transform_indices = @transform_2, window_bounds = array<i64: 3, 1, 128>}, {transform_indices = @transform_3, window_bounds = array<i64: 1, 128>}]} {
    %c0 = arith.constant 0 : index
    %c0_0 = arith.constant 0 : index
    %c0_1 = arith.constant 0 : index
    %0 = vector.load %arg3[%c0, %c0_0, %c0_1] : memref<3x1x128xf32, #tpu.memory_space<vmem>>, vector<1x1x128xf32>
    %1 = vector.shape_cast %0 : vector<1x1x128xf32> to vector<1x128xf32>
    %c1 = arith.constant 1 : index
    %c0_2 = arith.constant 0 : index
    %c0_3 = arith.constant 0 : index
    %2 = vector.load %arg3[%c1, %c0_2, %c0_3] : memref<3x1x128xf32, #tpu.memory_space<vmem>>, vector<1x1x128xf32>
    %3 = vector.shape_cast %2 : vector<1x1x128xf32> to vector<1x128xf32>
    %c2 = arith.constant 2 : index
    %c0_4 = arith.constant 0 : index
    %c0_5 = arith.constant 0 : index
    %4 = vector.load %arg3[%c2, %c0_4, %c0_5] : memref<3x1x128xf32, #tpu.memory_space<vmem>>, vector<1x1x128xf32>
    %5 = vector.shape_cast %4 : vector<1x1x128xf32> to vector<1x128xf32>
    %c0_6 = arith.constant 0 : index
    %6 = memref.load %arg1[%c0_6] : memref<3xf32, #tpu.memory_space<smem>>
    %7 = vector.broadcast %6 : f32 to vector<1x128xf32>
    %8 = arith.mulf %7, %1 : vector<1x128xf32>
    %c1_7 = arith.constant 1 : index
    %9 = memref.load %arg1[%c1_7] : memref<3xf32, #tpu.memory_space<smem>>
    %10 = vector.broadcast %9 : f32 to vector<1x128xf32>
    %11 = arith.mulf %10, %3 : vector<1x128xf32>
    %12 = arith.addf %8, %11 : vector<1x128xf32>
    %c2_8 = arith.constant 2 : index
    %13 = memref.load %arg1[%c2_8] : memref<3xf32, #tpu.memory_space<smem>>
    %14 = vector.broadcast %13 : f32 to vector<1x128xf32>
    %15 = arith.mulf %14, %5 : vector<1x128xf32>
    %16 = arith.addf %12, %15 : vector<1x128xf32>
    %c0_9 = arith.constant 0 : index
    %17 = memref.load %arg2[%c0_9] : memref<1xf32, #tpu.memory_space<smem>>
    %18 = vector.broadcast %17 : f32 to vector<1x128xf32>
    %19 = arith.addf %16, %18 : vector<1x128xf32>
    %20 = math.exp %19 : vector<1x128xf32>
    %c0_10 = arith.constant 0 : index
    %c0_11 = arith.constant 0 : index
    %21 = vector.load %arg4[%c0_10, %c0_11] : memref<1x128xf32, #tpu.memory_space<vmem>>, vector<1x128xf32>
    tpu.vector_store %arg4[%c0_10, %c0_11], %20 {strides = array<i32>} : memref<1x128xf32, #tpu.memory_space<vmem>>, vector<1x128xf32>,
    return
  }
  func.func @transform_0(%arg0: i32) -> i32 {
    %c0_i32 = arith.constant 0 : i32
    %c0_i32_0 = arith.constant 0 : i32
    return %c0_i32 : i32
  }
  func.func @transform_1(%arg0: i32) -> i32 {
    %c0_i32 = arith.constant 0 : i32
    %c0_i32_0 = arith.constant 0 : i32
    return %c0_i32 : i32
  }
  func.func @transform_2(%arg0: i32) -> (i32, i32, i32) {
    %c0_i32 = arith.constant 0 : i32
    %c0_i32_0 = arith.constant 0 : i32
    %c0_i32_1 = arith.constant 0 : i32
    return %c0_i32, %arg0, %c0_i32_0 : i32, i32, i32
  }
  func.func @transform_3(%arg0: i32) -> (i32, i32) {
    %c0_i32 = arith.constant 0 : i32
    %c0_i32_0 = arith.constant 0 : i32
    return %arg0, %c0_i32 : i32, i32
  }
}

</mosaic_0001>

<bundles_post_ra>
// kernel: tpu_custom_call.1
= control target key start
LH: loop header
LB: loop body
LE: loop exit
PB: predicated region body
PF: predicated region fallthrough
CT: control target
= control target key end

     0   :  { %9 = vsyncpa [#allocation5], 0  ;;  %s161_s0 = inlined_call_operand.vmem [shape: f32[3], index: 0, kind: input, shape index: {}]   ;;  %s162_s1 = inlined_call_operand.<no memory space> [shape: f32[1], index: 1, kind: input, shape index: {}]   ;;  %s163_s2 = inlined_call_operand.vmem [shape: f32[3,1,128], index: 2, kind: input, shape index: {}]   ;;  %s164_s3 = inlined_call_operand.hbm [shape: f32[1,128], index: 3, kind: output, shape index: {}]  }
   0x1   :  { %10 = vsyncpa [#allocation4], 0  ;;  %s17_s14 = sshll.u32 %s161_s0, 4  ;;  %s18_s14 = int_to_ptr.vmem [resolvable:$true] %s17_s14 }
   0x2   :  { %s74_s15 = scalar_lea.vmem %s18_s14, 16  ;;  %p79_p1 = scmp.lt.s32.totalorder %s18_s14, %s18_s14 }
   0x3   :  { %p75_p0 = scmp.ne.s32.totalorder %s18_s14, %s74_s15  ;;  %p80_p2 = scmp.lt.s32.totalorder %s74_s15, %s74_s15 }
   0x5   :  { %p81_p3 = por %p80_p2, %p79_p1 }
   0x7   :  { %p82_p4 = pnand %p81_p3, %p75_p0 }
   0x9   :  { %85 = shalt.err (!%p82_p4)
}
   0xa   :  { %s112_s16 = smov [#allocation3]  }
   0xb   :  { %20 = dma.vmem_to_smem %s18_s14, 16, %s112_s16, [#allocation5]  }
   0xc   :  { %108 = dma.done.wait [#allocation5], 16  }
   0xd   :  { %109 = vsyncadd [#allocation5], 4294967280 }
   0xe   :  { %28 = sfence }
   0xf   :  { %s34_s17 = sld [smem:[#allocation3]]  ;;  %s68_s18 = sld [smem:[#allocation3 + $0x1]]  ;;  %v29_v0 = vld [vmem:[%s163_s2] sm:$0x1]  ;;  %v66_v1 = vld [vmem:[%s163_s2 + $0x1] sm:$0x1]  ;;  %v46_v10 = vstv %s162_s1 }
  0x10   :  { %s69_s19 = sld [smem:[#allocation3 + $0x2]]  ;;  %v67_v2 = vld [vmem:[%s163_s2 + $0x2] sm:$0x1]  ;;  %s113_s27 = smov [#allocation6]  }
  0x11   :  { %s57_s28 = sshll.u32 %s113_s27, 4  ;;  %s58_s28 = int_to_ptr.vmem [resolvable:$true] %s57_s28 }
  0x12   :  { %s86_s2 = scalar_lea.vmem %s58_s28, 16  ;;  %s90_s29 = scalar_lea.vmem %s58_s28, 32 }
  0x13   :  { %p87_p5 = scmp.ne.s32.totalorder %s58_s28, %s86_s2  ;;  %p91_p6 = scmp.lt.s32.totalorder %s58_s28, %s58_s28 }
  0x14   :  { %p92_p7 = scmp.lt.s32.totalorder %s90_s29, %s86_s2 }
  0x15   :  { %v35_v3 = vstv %s34_s17  ;;  %v38_v4 = vstv %s68_s18 }
  0x16   :  { %v36_v5 = vmul.f32 %v35_v3, %v29_v0  ;;  %v39_v6 = vmul.f32 %v66_v1, %v38_v4  ;;  %v42_v7 = vstv %s69_s19  ;;  %p93_p8 = por %p92_p7, %p91_p6 }
  0x17   :  { %v43_v8 = vmul.f32 %v67_v2, %v42_v7 }
  0x18   :  { %v40_v9 = vadd.f32 %v39_v6, %v36_v5  ;;  %p94_p9 = pnand %p93_p8, %p87_p5 }
  0x1a   :  { %v44_v11 = vadd.f32 %v43_v8, %v40_v9 }
  0x1c   :  { %v47_v12 = vadd.f32 %v46_v10, %v44_v11 }
  0x1e   :  { %v48_v13 = vmul.f32 1.442695, %v47_v12 }
  0x20   :  { %72 = vpow2.f32 %v48_v13 }
  0x2a   :  { %v73_v14 = vpop.eup %72 }
  0x2b   :  { %50 = vst [vmem:[#allocation6] sm:$0x1] %v73_v14 }
  0x2c   :  { %97 = shalt.err (!%p94_p9)
}
  0x2d   :  { %s98_s1 = scalar_lea.hbm %s164_s3, 16 }
  0x2e   :  { %p99_p10 = scmp.ne.s32.totalorder %s164_s3, %s98_s1  ;;  %p102_p11 = scmp.lt.u32.totalorder %s98_s1, %s164_s3 }
  0x30   :  { %p104_p12 = pnand %p102_p11, %p99_p10 }
  0x32   :  { %107 = shalt.err (!%p104_p12)
}
  0x33   :  { %60 = dma.vmem_to_hbm [thread:$0]  %s58_s28, 16, %s164_s3, [#allocation4]  }
  0x34   :  { %110 = dma.done.wait [#allocation4], 16  }
  0x35   :  { %111 = vsyncadd [#allocation4], 4294967280 }
  0x36   :  { %64 = vsyncpa [#allocation4], 1 }
  0x37   :  { %65 = vsyncpa [#allocation5], 1 }

</bundles_post_ra>
